<compile_context>
chip_gen: v5e
topology: v5e:2x2
jax: 0.10.0
libtpu: 0.0.40
codegen_flags: <defaults>
</compile_context>

<pallas_src>
import functools

import jax
import jax.numpy as jnp
from jax.experimental import pallas as pl
from jax.experimental.pallas import tpu as pltpu


def _round_up(x, m):
    return ((x + m - 1) // m) * m


def _cdiv(a, b):
    return -(-a // b)


def critic_mlp_kernel(x_ref, w1_ref, b1_ref, w2_ref, b2_ref, w3t_ref, b3_ref, o_ref):
    # fc1 + ReLU: (TB, n_states) @ (n_states, H1) -> f32 accum; bias/ReLU in f32.
    h1 = jnp.dot(x_ref[...], w1_ref[...], preferred_element_type=jnp.float32) + b1_ref[...]
    h1 = jnp.maximum(h1, 0.0)
    # fc2 + ReLU
    h2 = jnp.dot(h1.astype(w2_ref.dtype), w2_ref[...],
                 preferred_element_type=jnp.float32) + b2_ref[...]
    h2 = jnp.maximum(h2, 0.0)
    # fc3 (value head), computed transposed: w3t (n_out, H2) contracted with h2 (TB, H2)
    # over H2 -> (n_out, TB).  Lane dim is the batch tile => narrow, lane-dense store.
    v = jax.lax.dot_general(w3t_ref[...], h2.astype(w3t_ref.dtype),
                            dimension_numbers=(((1,), (1,)), ((), ())),
                            preferred_element_type=jnp.float32)
    o_ref[...] = (v + b3_ref[...]).astype(o_ref.dtype)


def prepare_params(params, *, compute_dtype=jnp.bfloat16):
    """Pad/cast weights ONCE (hoisted out of the per-call path).

    Weights -> compute_dtype (bf16 default), hidden dims padded to 128 so the internal
    matmuls are MXU/lane friendly.  The fc1 contraction dim stays at the true n_states
    (matches the unpadded x).  fc3 is stored transposed (n_out, H2) so the kernel can
    emit a batch-lane-dense (n_out, TB) output.  Biases stay f32 (f32 epilogue).
    """
    w1, b1, w2, b2, w3, b3 = (params[k] for k in ("w1", "b1", "w2", "b2", "w3", "b3"))
    n_states, h1 = w1.shape
    h2 = w2.shape[1]
    n_out = w3.shape[1]
    # TODO(synk): on v6e/v7x pad hidden dims to 256 if the net grows compute-bound (MXU is 2x256^2).
    H1 = _round_up(h1, 128)
    H2 = _round_up(h2, 128)

    def pad2(a, rows, cols, dtype):
        return jnp.pad(a, ((0, rows - a.shape[0]), (0, cols - a.shape[1]))).astype(dtype)

    return {
        "w1": pad2(w1, n_states, H1, compute_dtype),          # (n_states, H1)
        "b1": pad2(b1, 1, H1, jnp.float32),                   # (1, H1)
        "w2": pad2(w2, H1, H2, compute_dtype),                # (H1, H2)
        "b2": pad2(b2, 1, H2, jnp.float32),                   # (1, H2)
        "w3t": pad2(w3.T, n_out, H2, compute_dtype),          # (n_out, H2)  transposed head
        "b3": b3.reshape(n_out, 1).astype(jnp.float32),       # (n_out, 1)   broadcasts over lanes
    }


def _choose_tile(B, block_batch):
    """Right-size the batch tile: one step for small B; otherwise a 128-aligned tile sized
    to cdiv(B, n_steps) so B_pad - B stays small and per-step overhead is amortized."""
    b_small = _round_up(B, 8)
    if b_small <= block_batch:
        return b_small, b_small                      # single grid step (TB == B_pad, legal block)
    n_steps = _cdiv(B, block_batch)
    tb = _round_up(_cdiv(B, n_steps), 128)           # multiple of 128 -> lane-dense output store
    return tb, _round_up(B, tb)


def critic_forward(x, prepared, *, block_batch=1024):
    """x: (B, n_states) f32; prepared: output of prepare_params()."""
    w1, b1, w2, b2, w3t, b3 = (prepared[k] for k in ("w1", "b1", "w2", "b2", "w3t", "b3"))
    B, n_states = x.shape
    assert w1.shape[0] == n_states
    H1, H2 = w1.shape[1], w2.shape[1]
    n_out = w3t.shape[0]
    compute_dtype = w1.dtype

    TB, B_pad = _choose_tile(B, block_batch)

    # Pad only the batch rows (to a whole number of tiles) and cast. The feature width is
    # NOT padded -> no 8x inflation of the x DMA. Padded rows produce garbage that lands in
    # out[:, B:] and is stripped below.
    xp = jnp.pad(x, ((0, B_pad - B), (0, 0))).astype(compute_dtype)

    resident = lambda i: (0, 0)  # weights/biases: same block every step -> stay resident in VMEM

    out = pl.pallas_call(
        critic_mlp_kernel,
        out_shape=jax.ShapeDtypeStruct((n_out, B_pad), jnp.float32),
        grid_spec=pltpu.PrefetchScalarGridSpec(
            num_scalar_prefetch=0,
            grid=(B_pad // TB,),
            in_specs=[
                pl.BlockSpec((TB, n_states), lambda i: (i, 0)),  # x: tiled over batch, true width
                pl.BlockSpec((n_states, H1), resident),
                pl.BlockSpec((1, H1), resident),
                pl.BlockSpec((H1, H2), resident),
                pl.BlockSpec((1, H2), resident),
                pl.BlockSpec((n_out, H2), resident),
                pl.BlockSpec((n_out, 1), resident),
            ],
            out_specs=pl.BlockSpec((n_out, TB), lambda i: (0, i)),  # batch on lanes, narrow rows
        ),
        compiler_params=pltpu.CompilerParams(
            dimension_semantics=("parallel",),  # shard batch tiles across TCs (v7x megacore)
        ),
    )(xp, w1, b1, w2, b2, w3t, b3)

    # (n_out, B_pad) -> (B, n_out): strip padded batch columns, transpose back.
    return out[:, :B].T


def init_params(key, n_states, hidden_size, n_outputs=1):
    """Deterministic init mirroring nn.Linear default: U(-1/sqrt(fan_in), 1/sqrt(fan_in))."""
    dims = [n_states, hidden_size[0], hidden_size[1], n_outputs]
    params = {}
    keys = jax.random.split(key, 6)
    for i in range(3):
        fan_in = dims[i]
        bound = 1.0 / jnp.sqrt(jnp.float32(fan_in))
        w = jax.random.uniform(keys[2 * i], (dims[i], dims[i + 1]),
                               minval=-bound, maxval=bound, dtype=jnp.float32)
        b = jax.random.uniform(keys[2 * i + 1], (1, dims[i + 1]),
                               minval=-bound, maxval=bound, dtype=jnp.float32)
        params[f"w{i + 1}"] = w
        params[f"b{i + 1}"] = b
    return params


if __name__ == "__main__":
    n_states = 16
    hidden_size = (32, 32)
    n_outputs = 1
    batch = 8

    key = jax.random.PRNGKey(0)
    k_params, k_x = jax.random.split(key)
    params = init_params(k_params, n_states, hidden_size, n_outputs)
    x = jax.random.normal(k_x, (batch, n_states), dtype=jnp.float32)

    # Pure-JAX reference
    h1 = jnp.maximum(x @ params["w1"] + params["b1"], 0.0)
    h2 = jnp.maximum(h1 @ params["w2"] + params["b2"], 0.0)
    ref = h2 @ params["w3"] + params["b3"]

    # f32 operand path: tight check against the reference.
    prep_f32 = prepare_params(params, compute_dtype=jnp.float32)
    fwd_f32 = jax.jit(functools.partial(critic_forward, prepared=prep_f32))
    out_f32 = jax.block_until_ready(fwd_f32(x))
    assert out_f32.shape == (batch, n_outputs)
    assert jnp.allclose(out_f32, ref, atol=1e-5, rtol=1e-5)

    # Default path: bf16 operands, f32 MXU accumulation + f32 epilogue (looser tolerance).
    prep_bf16 = prepare_params(params)  # compute_dtype=jnp.bfloat16
    fwd_bf16 = jax.jit(functools.partial(critic_forward, prepared=prep_bf16))
    out_bf16 = jax.block_until_ready(fwd_bf16(x))
    assert out_bf16.shape == (batch, n_outputs)
    assert jnp.allclose(out_bf16, ref, atol=5e-2, rtol=5e-2)

    print("KERNEL_OK")
</pallas_src>

<mosaic_0001>
module attributes {stable_mosaic.version = 11 : i64} {
  func.func @critic_mlp_kernel(%arg0: i32, %arg1: memref<8x16xf32, #tpu.memory_space<vmem>>, %arg2: memref<16x128xf32, #tpu.memory_space<vmem>>, %arg3: memref<1x128xf32, #tpu.memory_space<vmem>>, %arg4: memref<128x128xf32, #tpu.memory_space<vmem>>, %arg5: memref<1x128xf32, #tpu.memory_space<vmem>>, %arg6: memref<1x128xf32, #tpu.memory_space<vmem>>, %arg7: memref<1x1xf32, #tpu.memory_space<vmem>>, %arg8: memref<1x8xf32, #tpu.memory_space<vmem>>) attributes {dimension_semantics = [#tpu.dimension_semantics<parallel>], iteration_bounds = array<i64: 1>, scalar_prefetch = 0 : i64, scratch_operands = 0 : i64, tpu.core_type = #tpu.core_type<tc>, window_params = [{transform_indices = @transform_0, window_bounds = array<i64: 8, 16>}, {pipeline_mode = #tpu.pipeline_mode<synchronous>, transform_indices = @transform_1, window_bounds = array<i64: 16, 128>}, {pipeline_mode = #tpu.pipeline_mode<synchronous>, transform_indices = @transform_2, window_bounds = array<i64: 1, 128>}, {pipeline_mode = #tpu.pipeline_mode<synchronous>, transform_indices = @transform_3, window_bounds = array<i64: 128, 128>}, {pipeline_mode = #tpu.pipeline_mode<synchronous>, transform_indices = @transform_4, window_bounds = array<i64: 1, 128>}, {pipeline_mode = #tpu.pipeline_mode<synchronous>, transform_indices = @transform_5, window_bounds = array<i64: 1, 128>}, {pipeline_mode = #tpu.pipeline_mode<synchronous>, transform_indices = @transform_6, window_bounds = array<i64: 1, 1>}, {transform_indices = @transform_7, window_bounds = array<i64: 1, 8>}]} {
    %c0 = arith.constant 0 : index
    %c0_0 = arith.constant 0 : index
    %0 = vector.load %arg1[%c0, %c0_0] : memref<8x16xf32, #tpu.memory_space<vmem>>, vector<8x16xf32>
    %c0_1 = arith.constant 0 : index
    %c0_2 = arith.constant 0 : index
    %1 = vector.load %arg2[%c0_1, %c0_2] : memref<16x128xf32, #tpu.memory_space<vmem>>, vector<16x128xf32>
    %cst = arith.constant dense<0.000000e+00> : vector<8x128xf32>
    %2 = tpu.matmul %0, %1, %cst {dimension_numbers = #tpu.dot_dimension_numbers<[1], [0], [0], [1], [0, 0, 1, 1], [], []>} : vector<8x16xf32>, vector<16x128xf32>, vector<8x128xf32> -> vector<8x128xf32>
    %c0_3 = arith.constant 0 : index
    %c0_4 = arith.constant 0 : index
    %3 = vector.load %arg3[%c0_3, %c0_4] : memref<1x128xf32, #tpu.memory_space<vmem>>, vector<1x128xf32>
    %4 = vector.broadcast %3 : vector<1x128xf32> to vector<8x128xf32>
    %5 = arith.addf %2, %4 : vector<8x128xf32>
    %cst_5 = arith.constant 0.000000e+00 : f32
    %6 = vector.broadcast %cst_5 : f32 to vector<8x128xf32>
    %7 = arith.maximumf %5, %6 : vector<8x128xf32>
    %c0_6 = arith.constant 0 : index
    %c0_7 = arith.constant 0 : index
    %8 = vector.load %arg4[%c0_6, %c0_7] : memref<128x128xf32, #tpu.memory_space<vmem>>, vector<128x128xf32>
    %cst_8 = arith.constant dense<0.000000e+00> : vector<8x128xf32>
    %9 = tpu.matmul %7, %8, %cst_8 {dimension_numbers = #tpu.dot_dimension_numbers<[1], [0], [0], [1], [0, 0, 1, 1], [], []>} : vector<8x128xf32>, vector<128x128xf32>, vector<8x128xf32> -> vector<8x128xf32>
    %c0_9 = arith.constant 0 : index
    %c0_10 = arith.constant 0 : index
    %10 = vector.load %arg5[%c0_9, %c0_10] : memref<1x128xf32, #tpu.memory_space<vmem>>, vector<1x128xf32>
    %11 = vector.broadcast %10 : vector<1x128xf32> to vector<8x128xf32>
    %12 = arith.addf %9, %11 : vector<8x128xf32>
    %cst_11 = arith.constant 0.000000e+00 : f32
    %13 = vector.broadcast %cst_11 : f32 to vector<8x128xf32>
    %14 = arith.maximumf %12, %13 : vector<8x128xf32>
    %c0_12 = arith.constant 0 : index
    %c0_13 = arith.constant 0 : index
    %15 = vector.load %arg6[%c0_12, %c0_13] : memref<1x128xf32, #tpu.memory_space<vmem>>, vector<1x128xf32>
    %cst_14 = arith.constant dense<0.000000e+00> : vector<1x8xf32>
    %16 = tpu.matmul %15, %14, %cst_14 {dimension_numbers = #tpu.dot_dimension_numbers<[1], [1], [0], [0], [0, 0, 1, 0], [], []>} : vector<1x128xf32>, vector<8x128xf32>, vector<1x8xf32> -> vector<1x8xf32>
    %c0_15 = arith.constant 0 : index
    %c0_16 = arith.constant 0 : index
    %17 = vector.load %arg7[%c0_15, %c0_16] : memref<1x1xf32, #tpu.memory_space<vmem>>, vector<1x1xf32>
    %18 = vector.broadcast %17 : vector<1x1xf32> to vector<1x8xf32>
    %19 = arith.addf %16, %18 : vector<1x8xf32>
    %c0_17 = arith.constant 0 : index
    %c0_18 = arith.constant 0 : index
    %20 = vector.load %arg8[%c0_17, %c0_18] : memref<1x8xf32, #tpu.memory_space<vmem>>, vector<1x8xf32>
    tpu.vector_store %arg8[%c0_17, %c0_18], %19 {strides = array<i32>} : memref<1x8xf32, #tpu.memory_space<vmem>>, vector<1x8xf32>,
    return
  }
  func.func @transform_0(%arg0: i32) -> (i32, i32) {
    %c0_i32 = arith.constant 0 : i32
    %c0_i32_0 = arith.constant 0 : i32
    return %arg0, %c0_i32 : i32, i32
  }
  func.func @transform_1(%arg0: i32) -> (i32, i32) {
    %c0_i32 = arith.constant 0 : i32
    %c0_i32_0 = arith.constant 0 : i32
    %c0_i32_1 = arith.constant 0 : i32
    return %c0_i32, %c0_i32_0 : i32, i32
  }
  func.func @transform_2(%arg0: i32) -> (i32, i32) {
    %c0_i32 = arith.constant 0 : i32
    %c0_i32_0 = arith.constant 0 : i32
    %c0_i32_1 = arith.constant 0 : i32
    return %c0_i32, %c0_i32_0 : i32, i32
  }
  func.func @transform_3(%arg0: i32) -> (i32, i32) {
    %c0_i32 = arith.constant 0 : i32
    %c0_i32_0 = arith.constant 0 : i32
    %c0_i32_1 = arith.constant 0 : i32
    return %c0_i32, %c0_i32_0 : i32, i32
  }
  func.func @transform_4(%arg0: i32) -> (i32, i32) {
    %c0_i32 = arith.constant 0 : i32
    %c0_i32_0 = arith.constant 0 : i32
    %c0_i32_1 = arith.constant 0 : i32
    return %c0_i32, %c0_i32_0 : i32, i32
  }
  func.func @transform_5(%arg0: i32) -> (i32, i32) {
    %c0_i32 = arith.constant 0 : i32
    %c0_i32_0 = arith.constant 0 : i32
    %c0_i32_1 = arith.constant 0 : i32
    return %c0_i32, %c0_i32_0 : i32, i32
  }
  func.func @transform_6(%arg0: i32) -> (i32, i32) {
    %c0_i32 = arith.constant 0 : i32
    %c0_i32_0 = arith.constant 0 : i32
    %c0_i32_1 = arith.constant 0 : i32
    return %c0_i32, %c0_i32_0 : i32, i32
  }
  func.func @transform_7(%arg0: i32) -> (i32, i32) {
    %c0_i32 = arith.constant 0 : i32
    %c0_i32_0 = arith.constant 0 : i32
    return %c0_i32, %arg0 : i32, i32
  }
}

</mosaic_0001>

<bundles_post_ra>
// kernel: critic_forward.1
= control target key start
LH: loop header
LB: loop body
LE: loop exit
PB: predicated region body
PF: predicated region fallthrough
CT: control target
= control target key end

     0   :  { %s422_s0 = inlined_call_operand.hbm [shape: f32[8,16], index: 0, kind: input, shape index: {}]   ;;  %s423_s1 = inlined_call_operand.hbm [shape: f32[16,128], index: 1, kind: input, shape index: {}]   ;;  %s424_s2 = inlined_call_operand.hbm [shape: f32[1,128], index: 2, kind: input, shape index: {}]   ;;  %s425_s3 = inlined_call_operand.hbm [shape: f32[128,128], index: 3, kind: input, shape index: {}]   ;;  %s426_s4 = inlined_call_operand.vmem [shape: f32[1,128], index: 4, kind: input, shape index: {}]   ;;  %s427_s5 = inlined_call_operand.vmem [shape: f32[1,128], index: 5, kind: input, shape index: {}]   ;;  %s428_s6 = inlined_call_operand.<no memory space> [shape: f32[1,1], index: 6, kind: input, shape index: {}]   ;;  %s429_s7 = inlined_call_operand.hbm [shape: f32[1,8], index: 7, kind: output, shape index: {}]  }
   0x1   :  { %v12_v0 = vstv %s428_s6 }
   0x2   :  { %13 = vst [vmem:[#allocation2] sm:$0x1] %v12_v0 }
   0x3   :  { %14 = vsyncpa [#allocation4], 0 }
   0x4   :  { %15 = vsyncpa [#allocation7], 0 }
   0x5   :  { %16 = vsyncpa [#allocation10], 0  ;;  %s33_s28 = sshll.u32 %s423_s1, 4  ;;  %s34_s28 = int_to_ptr.hbm [resolvable:$true] %s33_s28 }
   0x6   :  { %17 = vsyncpa [#allocation5], 0  ;;  %s350_s29 = smov [#allocation6]   ;;  %s23_s10 = sshll.u32 %s422_s0, 4  ;;  %s24_s10 = int_to_ptr.hbm [resolvable:$true] %s23_s10 }
   0x7   :  { %s35_s30 = sshll.u32 %s350_s29, 4  ;;  %s351_s11 = smov 128   ;;  %s36_s30 = int_to_ptr.vmem [resolvable:$true] %s35_s30 }
   0x8   :  { %s352_s12 = smov 8   ;;  %s353_s6 = smov [#allocation3]  }
   0x9   :  { %41 = dma.hbm_to_vmem [thread:$0]  %s34_s28, 256, %s36_s30, [#allocation7], %s351_s11, %s351_s11, %s352_s12  }
   0xa   :  { %s25_s13 = sshll.u32 %s353_s6, 4  ;;  %s47_s16 = sshll.u32 %s424_s2, 4  ;;  %s26_s13 = int_to_ptr.vmem [resolvable:$true] %s25_s13  ;;  %s48_s16 = int_to_ptr.hbm [resolvable:$true] %s47_s16 }
   0xb   :  { %28 = dma.hbm_to_vmem [thread:$0]  %s24_s10, 128, %s26_s13, [#allocation4]  }
   0xc   :  { %s57_s18 = sshll.u32 %s425_s3, 4  ;;  %s354_s19 = smov [#allocation8]   ;;  %s58_s18 = int_to_ptr.hbm [resolvable:$true] %s57_s18 }
   0xd   :  { %s49_s20 = sshll.u32 %s354_s19, 4  ;;  %s355_s0 = smov [#allocation9]   ;;  %s50_s20 = int_to_ptr.vmem [resolvable:$true] %s49_s20 }
   0xe   :  { %52 = dma.hbm_to_vmem [thread:$0]  %s48_s16, 16, %s50_s20, [#allocation7]  }
   0xf   :  { %s59_s21 = sshll.u32 %s355_s0, 4  ;;  %s60_s21 = int_to_ptr.vmem [resolvable:$true] %s59_s21 }
  0x10   :  { %65 = dma.hbm_to_vmem [thread:$0]  %s58_s18, 2048, %s60_s21, [#allocation10], %s351_s11, %s351_s11, %s352_s12  }
  0x11   :  { %342 = dma.done.wait [#allocation4], 128  }
  0x12   :  { %343 = vsyncadd [#allocation4], 4294967168 }
  0x13   :  { %344 = dma.done.wait [#allocation7], 272  }
  0x14   :  { %345 = vsyncadd [#allocation7], 4294967024 }
  0x15   :  { %346 = dma.done.wait [#allocation10], 2048  }
  0x16   :  { %347 = vsyncadd [#allocation10], 4294965248  ;;  %v90_v1 = vld [vmem:[#allocation6 + $0x8] sm:$0xff]  ;;  %v89_v2 = vld [vmem:[#allocation6] sm:$0xff]  ;;  %vm95_vm0 = vcmask 130048   ;;  %v356_v25 = vmov 0  }
  0x17   :  { %113 = vmatpush.msra.mxu0 %v90_v1  ;;  %v88_v3 = vld [vmem:[#allocation3] sm:$0xff]  ;;  %v135_v4 = vld [vmem:[#allocation9 + $0x78] sm:$0xff]  ;;  %v134_v5 = vld [vmem:[#allocation9 + $0x70] sm:$0xff]  ;;  %219 = vset.pattern.permute.xlu0 %v356_v25  ;;  %s357_s24 = smov [#allocation11]   ;;  %s198_s28 = sshll.u32 %s429_s7, 4  ;;  %vm189_vm1 = vcmask 57344   ;;  %s199_s28 = int_to_ptr.hbm [resolvable:$true] %s198_s28 }
  0x18   :  { %140 = vmatpush.msra.mxu1 %v135_v4  ;;  %v133_v6 = vld [vmem:[#allocation9 + $0x68] sm:$0xff]  ;;  %v132_v7 = vld [vmem:[#allocation9 + $0x60] sm:$0xff]  ;;  %v131_v8 = vld [vmem:[#allocation9 + $0x58] sm:$0xff]  ;;  %s196_s25 = sshll.u32 %s357_s24, 4  ;;  %s197_s25 = int_to_ptr.vmem [resolvable:$true] %s196_s25 }
  0x19   :  { %114 = vmatpush.msra.mxu0 %v89_v2  ;;  %v130_v9 = vld [vmem:[#allocation9 + $0x50] sm:$0xff]  ;;  %v129_v10 = vld [vmem:[#allocation9 + $0x48] sm:$0xff]  ;;  %v128_v11 = vld [vmem:[#allocation9 + $0x40] sm:$0xff] }
  0x1a   :  { %210 = vmatmul.msk.f32.vlgmr.msra.gmra.mxu0 %vm95_vm0, %v88_v3  ;;  %141 = vmatpush.msra.mxu1 %v134_v5  ;;  %v127_v12 = vld [vmem:[#allocation9 + $0x38] sm:$0xff]  ;;  %v126_v13 = vld [vmem:[#allocation9 + $0x30] sm:$0xff]  ;;  %v125_v14 = vld [vmem:[#allocation9 + $0x28] sm:$0xff] }
  0x1b   :  { %v124_v15 = vld [vmem:[#allocation9 + $0x20] sm:$0xff]  ;;  %v123_v16 = vld [vmem:[#allocation9 + $0x18] sm:$0xff]  ;;  %v122_v17 = vld [vmem:[#allocation9 + $0x10] sm:$0xff] }
  0x1c   :  { %142 = vmatpush.msra.mxu1 %v133_v6  ;;  %v121_v18 = vld [vmem:[#allocation9 + $0x8] sm:$0xff]  ;;  %v120_v19 = vld [vmem:[#allocation9] sm:$0xff]  ;;  %v220_v20 = vld [vmem:[#allocation8] ss:$0 sm:$0xff] }
  0x1d   :  { %v162_v24 = vld [vmem:[#allocation2] sm:$0x1] }
  0x1e   :  { %143 = vmatpush.msra.mxu1 %v132_v7  ;;  %165 = vperm.xlu0 %219, %v162_v24   ;;  %v221_v26 = vld [vmem:[%s426_s4] ss:$0 sm:$0xff] }
  0x1f   :  { %v161_v30 = vld [vmem:[%s427_s5] sm:$0x1] }
  0x20   :  { %144 = vmatpush.msra.mxu1 %v131_v8 }
  0x22   :  { %145 = vmatpush.msra.mxu1 %v130_v9 }
  0x24   :  { %146 = vmatpush.msra.mxu1 %v129_v10 }
  0x26   :  { %147 = vmatpush.msra.mxu1 %v128_v11 }
  0x28   :  { %148 = vmatpush.msra.mxu1 %v127_v12 }
  0x2a   :  { %149 = vmatpush.msra.mxu1 %v126_v13 }
  0x2c   :  { %150 = vmatpush.msra.mxu1 %v125_v14 }
  0x2e   :  { %151 = vmatpush.msra.mxu1 %v124_v15 }
  0x30   :  { %152 = vmatpush.msra.mxu1 %v123_v16 }
  0x32   :  { %153 = vmatpush.msra.mxu1 %v122_v17 }
  0x34   :  { %154 = vmatpush.msra.mxu1 %v121_v18 }
  0x36   :  { %155 = vmatpush.msra.mxu1 %v120_v19 }
  0x90   :  { %v166_v31 = vpop.permute.xlu0 %165 }
  0x91   :  { %v168_v32 = vperm.slane %v166_v31, 0 }
  0x97   :  { %v116_v21 = vpop.f32.mrf.mxu0 }
  0x98   :  { %v117_v22 = vadd.f32 %v220_v20, %v116_v21 }
  0x9a   :  { %v119_v23 = vmax.f32 %v117_v22, 0.0 }
  0x9c   :  { %156 = vmatmul.f32.vlgmr.msra.gmra.mxu1 %v119_v23 }
 0x119   :  { %v157_v27 = vpop.f32.mrf.mxu1 }
 0x11a   :  { %v158_v28 = vadd.f32 %v221_v26, %v157_v27 }
 0x11c   :  { %v160_v29 = vmax.f32 %v158_v28, 0.0 }
 0x11e   :  { %184 = vmatpush.xpose.msra.mxu2 %v160_v29 }
 0x121   :  { %185 = vmatmul.f32.vlgmr.msra.gmra.mxu2 %v161_v30 }
 0x1a4   :  { %v186_v33 = vpop.f32.mrf.mxu2 }
 0x1a5   :  { %v187_v34 = vadd.f32 %v186_v33, %v168_v32 }
 0x1a7   :  { %190 = vst.msk [vmem:[#allocation11] sm:$0x1] %vm189_vm1, %v187_v34 }
 0x1a8   :  { %201 = dma.vmem_to_hbm [thread:$0]  %s197_s25, 16, %s199_s28, [#allocation5]  }
 0x1a9   :  { %348 = dma.done.wait [#allocation5], 16  }
 0x1aa   :  { %349 = vsyncadd [#allocation5], 4294967280 }
 0x1ab   :  { %206 = vsyncpa [#allocation4], 1 }
 0x1ac   :  { %207 = vsyncpa [#allocation7], 1 }
 0x1ad   :  { %208 = vsyncpa [#allocation10], 1 }
 0x1ae   :  { %209 = vsyncpa [#allocation5], 1 }

</bundles_post_ra>
